<compile_context>
chip_gen: v5e
topology: v5e:2x2
jax: 0.10.0
libtpu: 0.0.40
codegen_flags: <defaults>
</compile_context>

<pallas_src>
import functools

import jax
import jax.numpy as jnp
from jax.experimental import pallas as pl
from jax.experimental.pallas import tpu as pltpu

EPS = 1e-5
LANE = 128


def _round_up(x, m):
    return (x + m - 1) // m * m


def _dmlp_kernel(x_ref,
                 w1_ref, b1_ref, g1_ref, be1_ref,
                 w2_ref, b2_ref, g2_ref, be2_ref,
                 w3_ref, b3_ref,
                 o_ref,
                 s1_ref, ss1_ref, s2_ref, ss2_ref,
                 *, batch, tile_b, eps):
    phase = pl.program_id(0)   # 0: h1 stats, 1: h2 stats, 2: write output
    j = pl.program_id(1)       # batch tile index
    inv_b = jnp.float32(1.0 / batch)

    @pl.when(jnp.logical_and(phase == 0, j == 0))
    def _init():
        s1_ref[...] = jnp.zeros_like(s1_ref)
        ss1_ref[...] = jnp.zeros_like(ss1_ref)
        s2_ref[...] = jnp.zeros_like(s2_ref)
        ss2_ref[...] = jnp.zeros_like(ss2_ref)

    # ---- Layer 1: Linear -> ReLU (recomputed every phase; MXU is idle-rich) --
    x = x_ref[...]                                    # bf16 (or f32) operand
    h1 = jnp.dot(x, w1_ref[...], preferred_element_type=jnp.float32) + b1_ref[...]
    h1 = jnp.maximum(h1, 0.0)

    # Batch-padding rows must not contribute to BN statistics.
    row = j * tile_b + jax.lax.broadcasted_iota(jnp.int32, (tile_b, 1), 0)
    valid = (row < batch).astype(jnp.float32)

    @pl.when(phase == 0)
    def _stats1():
        hm = h1 * valid
        s1_ref[...] += jnp.sum(hm, axis=0, keepdims=True)
        ss1_ref[...] += jnp.sum(hm * hm, axis=0, keepdims=True)

    @pl.when(phase >= 1)
    def _rest():
        # BatchNorm1d(128) with full-batch stats (single-pass sums).
        mu1 = s1_ref[...] * inv_b
        var1 = jnp.maximum(ss1_ref[...] * inv_b - mu1 * mu1, 0.0)
        h1n = (h1 - mu1) * jax.lax.rsqrt(var1 + eps) * g1_ref[...] + be1_ref[...]

        # ---- Layer 2: Linear -> ReLU ----
        h2 = jnp.dot(h1n.astype(w2_ref.dtype), w2_ref[...],
                     preferred_element_type=jnp.float32) + b2_ref[...]
        h2 = jnp.maximum(h2, 0.0)

        @pl.when(phase == 1)
        def _stats2():
            hm = h2 * valid
            s2_ref[...] += jnp.sum(hm, axis=0, keepdims=True)
            ss2_ref[...] += jnp.sum(hm * hm, axis=0, keepdims=True)

        @pl.when(phase == 2)
        def _write():
            # BatchNorm1d(64, lane-padded) + output Linear.
            mu2 = s2_ref[...] * inv_b
            var2 = jnp.maximum(ss2_ref[...] * inv_b - mu2 * mu2, 0.0)
            h2n = (h2 - mu2) * jax.lax.rsqrt(var2 + eps) * g2_ref[...] + be2_ref[...]
            y = jnp.dot(h2n.astype(w3_ref.dtype), w3_ref[...],
                        preferred_element_type=jnp.float32) + b3_ref[...]
            o_ref[...] = y.astype(o_ref.dtype)


def dmlp_forward(x, params, *, tile_b=512, compute_dtype=jnp.bfloat16):
    """x: (B, D) float32.  params: dict of weights (see init_params)."""
    B, D = x.shape
    w1, b1, g1, be1 = params["w1"], params["b1"], params["g1"], params["be1"]
    w2, b2, g2, be2 = params["w2"], params["b2"], params["g2"], params["be2"]
    w3, b3 = params["w3"], params["b3"]
    H1, H2, C = w1.shape[1], w2.shape[1], w3.shape[1]

    # Lane-pad every feature dimension to a multiple of 128 (exact: padded
    # features are identically zero through every layer).
    H1p, H2p, Cp = _round_up(H1, LANE), _round_up(H2, LANE), _round_up(C, LANE)

    def pad2(a, rows, cols):
        return jnp.pad(a, ((0, rows - a.shape[0]), (0, cols - a.shape[1])))

    w1p = pad2(w1, D, H1p).astype(compute_dtype)
    b1p, g1p, be1p = pad2(b1, 1, H1p), pad2(g1, 1, H1p), pad2(be1, 1, H1p)
    w2p = pad2(w2, H1p, H2p).astype(compute_dtype)
    b2p, g2p, be2p = pad2(b2, 1, H2p), pad2(g2, 1, H2p), pad2(be2, 1, H2p)
    w3p = pad2(w3, H2p, Cp).astype(compute_dtype)
    b3p = pad2(b3, 1, Cp)

    # Batch tiling (tile rows must be a multiple of 8).
    tb = min(tile_b, _round_up(B, 8))
    B_pad = _round_up(B, tb)
    nj = B_pad // tb
    x_p = jnp.pad(x, ((0, B_pad - B), (0, 0))).astype(compute_dtype)

    kernel = functools.partial(_dmlp_kernel, batch=B, tile_b=tb, eps=EPS)

    def wspec(shape):
        return pl.BlockSpec(shape, lambda p, j: (0, 0))   # resident, loaded once

    flops = 2 * B * (D * H1 + H1 * H2 + H2 * C)
    bytes_accessed = (3 * B_pad * D * x_p.dtype.itemsize        # x re-read per phase
                      + B_pad * Cp * 4                          # lane-dense output
                      + sum(int(a.size) * a.dtype.itemsize for a in
                            (w1p, b1p, g1p, be1p, w2p, b2p, g2p, be2p, w3p, b3p)))

    out_pad = pl.pallas_call(
        kernel,
        out_shape=jax.ShapeDtypeStruct((B_pad, Cp), jnp.float32),
        grid_spec=pltpu.PrefetchScalarGridSpec(
            num_scalar_prefetch=0,
            grid=(3, nj),
            in_specs=[
                pl.BlockSpec((tb, D), lambda p, j: (j, 0)),       # x tile
                wspec(w1p.shape), wspec(b1p.shape), wspec(g1p.shape), wspec(be1p.shape),
                wspec(w2p.shape), wspec(b2p.shape), wspec(g2p.shape), wspec(be2p.shape),
                wspec(w3p.shape), wspec(b3p.shape),
            ],
            # Output blocks only advance during phase 2 so each block gets
            # exactly one (correct) HBM writeback.
            out_specs=pl.BlockSpec((tb, Cp),
                                   lambda p, j: (jnp.where(p == 2, j, 0), 0)),
            scratch_shapes=[
                pltpu.VMEM((1, H1p), jnp.float32),   # sum(h1)
                pltpu.VMEM((1, H1p), jnp.float32),   # sum(h1^2)
                pltpu.VMEM((1, H2p), jnp.float32),   # sum(h2)
                pltpu.VMEM((1, H2p), jnp.float32),   # sum(h2^2)
            ],
        ),
        compiler_params=pltpu.CompilerParams(
            dimension_semantics=("arbitrary", "arbitrary"),
            vmem_limit_bytes=32 * 1024 * 1024,
        ),
        cost_estimate=pl.CostEstimate(flops=flops, transcendentals=0,
                                      bytes_accessed=bytes_accessed),
    )(x_p, w1p, b1p, g1p, be1p, w2p, b2p, g2p, be2p, w3p, b3p)

    return out_pad[:B, :C]


def init_params(key, D, C, mlp_dim=(128, 64)):
    """Deterministic init mimicking torch.nn.Linear default: U(-1/sqrt(fan_in), +).
    Weights are stored as (in_features, out_features) so the kernel computes
    y = x @ W + b."""
    layers = [D] + list(mlp_dim) + [C]
    params = {}
    names = ["1", "2", "3"]
    for n, (fi, fo) in zip(names, zip(layers[:-1], layers[1:])):
        key, kw, kb = jax.random.split(key, 3)
        bound = 1.0 / (fi ** 0.5)
        params["w" + n] = jax.random.uniform(kw, (fi, fo), jnp.float32, -bound, bound)
        params["b" + n] = jax.random.uniform(kb, (1, fo), jnp.float32, -bound, bound)
    # BatchNorm affine params (defaults gamma=1, beta=0) for the hidden layers.
    params["g1"] = jnp.ones((1, mlp_dim[0]), jnp.float32)
    params["be1"] = jnp.zeros((1, mlp_dim[0]), jnp.float32)
    params["g2"] = jnp.ones((1, mlp_dim[1]), jnp.float32)
    params["be2"] = jnp.zeros((1, mlp_dim[1]), jnp.float32)
    return params


def dmlp_reference(x, params, compute_dtype=jnp.float32):
    """Plain-JAX reference (matmul operands cast to compute_dtype, f32 accum)."""
    def lin(h, w, b):
        return jnp.dot(h.astype(compute_dtype), w.astype(compute_dtype),
                       preferred_element_type=jnp.float32) + b
    h = jnp.maximum(lin(x, params["w1"], params["b1"]), 0.0)
    mu = jnp.mean(h, 0, keepdims=True)
    var = jnp.mean((h - mu) ** 2, 0, keepdims=True)
    h = (h - mu) * jax.lax.rsqrt(var + EPS) * params["g1"] + params["be1"]
    h = jnp.maximum(lin(h, params["w2"], params["b2"]), 0.0)
    mu = jnp.mean(h, 0, keepdims=True)
    var = jnp.mean((h - mu) ** 2, 0, keepdims=True)
    h = (h - mu) * jax.lax.rsqrt(var + EPS) * params["g2"] + params["be2"]
    return lin(h, params["w3"], params["b3"])


if __name__ == "__main__":
    D, C, B = 32, 4, 8
    key = jax.random.PRNGKey(0)
    kx, kp = jax.random.split(key)
    x = jax.random.normal(kx, (B, D), jnp.float32)
    params = init_params(kp, D, C)

    # Small single-tile case.
    out = dmlp_forward(x, params)
    jax.block_until_ready(out)
    assert out.shape == (B, C)
    ref = dmlp_reference(x, params, compute_dtype=jnp.bfloat16)
    assert jnp.allclose(out, ref, atol=2e-2, rtol=2e-2), \
        float(jnp.max(jnp.abs(out - ref)))

    # Multi-tile case (exercises phase/accumulator logic and batch-pad masking).
    B2 = 300
    x2 = jax.random.normal(jax.random.PRNGKey(1), (B2, D), jnp.float32)
    out2 = dmlp_forward(x2, params, tile_b=128)
    jax.block_until_ready(out2)
    ref2 = dmlp_reference(x2, params, compute_dtype=jnp.bfloat16)
    assert out2.shape == (B2, C)
    assert jnp.allclose(out2, ref2, atol=2e-2, rtol=2e-2), \
        float(jnp.max(jnp.abs(out2 - ref2)))

    print("KERNEL_OK")
</pallas_src>

<mosaic_0001>
module attributes {stable_mosaic.version = 11 : i64} {
  func.func @_dmlp_kernel(%arg0: i32, %arg1: i32, %arg2: memref<8x32xbf16, #tpu.memory_space<vmem>>, %arg3: memref<32x128xbf16, #tpu.memory_space<vmem>>, %arg4: memref<1x128xf32, #tpu.memory_space<vmem>>, %arg5: memref<1x128xf32, #tpu.memory_space<vmem>>, %arg6: memref<1x128xf32, #tpu.memory_space<vmem>>, %arg7: memref<128x128xbf16, #tpu.memory_space<vmem>>, %arg8: memref<1x128xf32, #tpu.memory_space<vmem>>, %arg9: memref<1x128xf32, #tpu.memory_space<vmem>>, %arg10: memref<1x128xf32, #tpu.memory_space<vmem>>, %arg11: memref<128x128xbf16, #tpu.memory_space<vmem>>, %arg12: memref<1x128xf32, #tpu.memory_space<vmem>>, %arg13: memref<8x128xf32, #tpu.memory_space<vmem>>, %arg14: memref<1x128xf32, #tpu.memory_space<vmem>>, %arg15: memref<1x128xf32, #tpu.memory_space<vmem>>, %arg16: memref<1x128xf32, #tpu.memory_space<vmem>>, %arg17: memref<1x128xf32, #tpu.memory_space<vmem>>) attributes {dimension_semantics = [#tpu.dimension_semantics<arbitrary>, #tpu.dimension_semantics<arbitrary>], iteration_bounds = array<i64: 3, 1>, scalar_prefetch = 0 : i64, scratch_operands = 4 : i64, tpu.core_type = #tpu.core_type<tc>, window_params = [{transform_indices = @transform_0, window_bounds = array<i64: 8, 32>}, {pipeline_mode = #tpu.pipeline_mode<synchronous>, transform_indices = @transform_1, window_bounds = array<i64: 32, 128>}, {pipeline_mode = #tpu.pipeline_mode<synchronous>, transform_indices = @transform_2, window_bounds = array<i64: 1, 128>}, {pipeline_mode = #tpu.pipeline_mode<synchronous>, transform_indices = @transform_3, window_bounds = array<i64: 1, 128>}, {pipeline_mode = #tpu.pipeline_mode<synchronous>, transform_indices = @transform_4, window_bounds = array<i64: 1, 128>}, {pipeline_mode = #tpu.pipeline_mode<synchronous>, transform_indices = @transform_5, window_bounds = array<i64: 128, 128>}, {pipeline_mode = #tpu.pipeline_mode<synchronous>, transform_indices = @transform_6, window_bounds = array<i64: 1, 128>}, {pipeline_mode = #tpu.pipeline_mode<synchronous>, transform_indices = @transform_7, window_bounds = array<i64: 1, 128>}, {pipeline_mode = #tpu.pipeline_mode<synchronous>, transform_indices = @transform_8, window_bounds = array<i64: 1, 128>}, {pipeline_mode = #tpu.pipeline_mode<synchronous>, transform_indices = @transform_9, window_bounds = array<i64: 128, 128>}, {pipeline_mode = #tpu.pipeline_mode<synchronous>, transform_indices = @transform_10, window_bounds = array<i64: 1, 128>}, {transform_indices = @transform_11, window_bounds = array<i64: 8, 128>}]} {
    %c0_i32 = arith.constant 0 : i32
    %0 = arith.cmpi eq, %arg0, %c0_i32 : i32
    %c0_i32_0 = arith.constant 0 : i32
    %1 = arith.cmpi eq, %arg1, %c0_i32_0 : i32
    %2 = arith.andi %0, %1 : i1
    %3 = arith.extui %2 : i1 to i32
    %c0_i32_1 = arith.constant 0 : i32
    %4 = arith.cmpi ne, %3, %c0_i32_1 : i32
    scf.if %4 {
      %cst_13 = arith.constant 0.000000e+00 : f32
      %27 = vector.broadcast %cst_13 : f32 to vector<1x128xf32>
      %c0_14 = arith.constant 0 : index
      %c0_15 = arith.constant 0 : index
      %28 = vector.load %arg14[%c0_14, %c0_15] : memref<1x128xf32, #tpu.memory_space<vmem>>, vector<1x128xf32>
      tpu.vector_store %arg14[%c0_14, %c0_15], %27 {strides = array<i32>} : memref<1x128xf32, #tpu.memory_space<vmem>>, vector<1x128xf32>,
      %cst_16 = arith.constant 0.000000e+00 : f32
      %29 = vector.broadcast %cst_16 : f32 to vector<1x128xf32>
      %c0_17 = arith.constant 0 : index
      %c0_18 = arith.constant 0 : index
      %30 = vector.load %arg15[%c0_17, %c0_18] : memref<1x128xf32, #tpu.memory_space<vmem>>, vector<1x128xf32>
      tpu.vector_store %arg15[%c0_17, %c0_18], %29 {strides = array<i32>} : memref<1x128xf32, #tpu.memory_space<vmem>>, vector<1x128xf32>,
      %cst_19 = arith.constant 0.000000e+00 : f32
      %31 = vector.broadcast %cst_19 : f32 to vector<1x128xf32>
      %c0_20 = arith.constant 0 : index
      %c0_21 = arith.constant 0 : index
      %32 = vector.load %arg16[%c0_20, %c0_21] : memref<1x128xf32, #tpu.memory_space<vmem>>, vector<1x128xf32>
      tpu.vector_store %arg16[%c0_20, %c0_21], %31 {strides = array<i32>} : memref<1x128xf32, #tpu.memory_space<vmem>>, vector<1x128xf32>,
      %cst_22 = arith.constant 0.000000e+00 : f32
      %33 = vector.broadcast %cst_22 : f32 to vector<1x128xf32>
      %c0_23 = arith.constant 0 : index
      %c0_24 = arith.constant 0 : index
      %34 = vector.load %arg17[%c0_23, %c0_24] : memref<1x128xf32, #tpu.memory_space<vmem>>, vector<1x128xf32>
      tpu.vector_store %arg17[%c0_23, %c0_24], %33 {strides = array<i32>} : memref<1x128xf32, #tpu.memory_space<vmem>>, vector<1x128xf32>,
    } else {
    }
    %c0 = arith.constant 0 : index
    %c0_2 = arith.constant 0 : index
    %5 = vector.load %arg2[%c0, %c0_2] : memref<8x32xbf16, #tpu.memory_space<vmem>>, vector<8x32xbf16>
    %c0_3 = arith.constant 0 : index
    %c0_4 = arith.constant 0 : index
    %6 = vector.load %arg3[%c0_3, %c0_4] : memref<32x128xbf16, #tpu.memory_space<vmem>>, vector<32x128xbf16>
    %cst = arith.constant dense<0.000000e+00> : vector<8x128xf32>
    %7 = tpu.matmul %5, %6, %cst {dimension_numbers = #tpu.dot_dimension_numbers<[1], [0], [0], [1], [0, 0, 1, 1], [], []>} : vector<8x32xbf16>, vector<32x128xbf16>, vector<8x128xf32> -> vector<8x128xf32>
    %c0_5 = arith.constant 0 : index
    %c0_6 = arith.constant 0 : index
    %8 = vector.load %arg4[%c0_5, %c0_6] : memref<1x128xf32, #tpu.memory_space<vmem>>, vector<1x128xf32>
    %9 = vector.broadcast %8 : vector<1x128xf32> to vector<8x128xf32>
    %10 = arith.addf %7, %9 : vector<8x128xf32>
    %cst_7 = arith.constant 0.000000e+00 : f32
    %11 = vector.broadcast %cst_7 : f32 to vector<8x128xf32>
    %12 = arith.maximumf %10, %11 : vector<8x128xf32>
    %c8_i32 = arith.constant 8 : i32
    %13 = arith.muli %arg1, %c8_i32 : i32
    %14 = tpu.iota {dimensions = array<i32: 0>} : vector<8x1xi32>
    %15 = vector.broadcast %13 : i32 to vector<8x1xi32>
    %16 = arith.addi %15, %14 : vector<8x1xi32>
    %c8_i32_8 = arith.constant 8 : i32
    %17 = vector.broadcast %c8_i32_8 : i32 to vector<8x1xi32>
    %18 = arith.cmpi slt, %16, %17 : vector<8x1xi32>
    %19 = arith.extui %18 : vector<8x1xi1> to vector<8x1xi32>
    %20 = arith.sitofp %19 : vector<8x1xi32> to vector<8x1xf32>
    %c0_i32_9 = arith.constant 0 : i32
    %21 = arith.cmpi eq, %arg0, %c0_i32_9 : i32
    %22 = arith.extui %21 : i1 to i32
    %c0_i32_10 = arith.constant 0 : i32
    %23 = arith.cmpi ne, %22, %c0_i32_10 : i32
    scf.if %23 {
      %27 = vector.broadcast %20 : vector<8x1xf32> to vector<8x128xf32>
      %28 = arith.mulf %12, %27 : vector<8x128xf32>
      %c0_13 = arith.constant 0 : index
      %c0_14 = arith.constant 0 : index
      %29 = vector.load %arg14[%c0_13, %c0_14] : memref<1x128xf32, #tpu.memory_space<vmem>>, vector<1x128xf32>
      %cst_15 = arith.constant dense<0.000000e+00> : vector<128xf32>
      %30 = vector.multi_reduction <add>, %28, %cst_15 [0] : vector<8x128xf32> to vector<128xf32>
      %31 = vector.shape_cast %30 : vector<128xf32> to vector<1x128xf32>
      %32 = arith.addf %29, %31 : vector<1x128xf32>
      %c0_16 = arith.constant 0 : index
      %c0_17 = arith.constant 0 : index
      %33 = vector.load %arg14[%c0_16, %c0_17] : memref<1x128xf32, #tpu.memory_space<vmem>>, vector<1x128xf32>
      tpu.vector_store %arg14[%c0_16, %c0_17], %32 {strides = array<i32>} : memref<1x128xf32, #tpu.memory_space<vmem>>, vector<1x128xf32>,
      %c0_18 = arith.constant 0 : index
      %c0_19 = arith.constant 0 : index
      %34 = vector.load %arg15[%c0_18, %c0_19] : memref<1x128xf32, #tpu.memory_space<vmem>>, vector<1x128xf32>
      %35 = arith.mulf %28, %28 : vector<8x128xf32>
      %cst_20 = arith.constant dense<0.000000e+00> : vector<128xf32>
      %36 = vector.multi_reduction <add>, %35, %cst_20 [0] : vector<8x128xf32> to vector<128xf32>
      %37 = vector.shape_cast %36 : vector<128xf32> to vector<1x128xf32>
      %38 = arith.addf %34, %37 : vector<1x128xf32>
      %c0_21 = arith.constant 0 : index
      %c0_22 = arith.constant 0 : index
      %39 = vector.load %arg15[%c0_21, %c0_22] : memref<1x128xf32, #tpu.memory_space<vmem>>, vector<1x128xf32>
      tpu.vector_store %arg15[%c0_21, %c0_22], %38 {strides = array<i32>} : memref<1x128xf32, #tpu.memory_space<vmem>>, vector<1x128xf32>,
    } else {
    }
    %c1_i32 = arith.constant 1 : i32
    %24 = arith.cmpi sge, %arg0, %c1_i32 : i32
    %25 = arith.extui %24 : i1 to i32
    %cst_11 = arith.constant 1.250000e-01 : f32
    %c0_i32_12 = arith.constant 0 : i32
    %26 = arith.cmpi ne, %25, %c0_i32_12 : i32
    scf.if %26 {
      %c0_13 = arith.constant 0 : index
      %c0_14 = arith.constant 0 : index
      %27 = vector.load %arg14[%c0_13, %c0_14] : memref<1x128xf32, #tpu.memory_space<vmem>>, vector<1x128xf32>
      %28 = vector.broadcast %cst_11 : f32 to vector<1x128xf32>
      %29 = arith.mulf %27, %28 : vector<1x128xf32>
      %c0_15 = arith.constant 0 : index
      %c0_16 = arith.constant 0 : index
      %30 = vector.load %arg15[%c0_15, %c0_16] : memref<1x128xf32, #tpu.memory_space<vmem>>, vector<1x128xf32>
      %31 = vector.broadcast %cst_11 : f32 to vector<1x128xf32>
      %32 = arith.mulf %30, %31 : vector<1x128xf32>
      %33 = arith.mulf %29, %29 : vector<1x128xf32>
      %34 = arith.subf %32, %33 : vector<1x128xf32>
      %cst_17 = arith.constant 0.000000e+00 : f32
      %35 = vector.broadcast %cst_17 : f32 to vector<1x128xf32>
      %36 = arith.maximumf %34, %35 : vector<1x128xf32>
      %37 = vector.broadcast %29 : vector<1x128xf32> to vector<8x128xf32>
      %38 = arith.subf %12, %37 : vector<8x128xf32>
      %cst_18 = arith.constant 9.99999974E-6 : f32
      %39 = vector.broadcast %cst_18 : f32 to vector<1x128xf32>
      %40 = arith.addf %36, %39 : vector<1x128xf32>
      %41 = math.rsqrt %40 : vector<1x128xf32>
      %42 = vector.broadcast %41 : vector<1x128xf32> to vector<8x128xf32>
      %43 = arith.mulf %38, %42 : vector<8x128xf32>
      %c0_19 = arith.constant 0 : index
      %c0_20 = arith.constant 0 : index
      %44 = vector.load %arg5[%c0_19, %c0_20] : memref<1x128xf32, #tpu.memory_space<vmem>>, vector<1x128xf32>
      %45 = vector.broadcast %44 : vector<1x128xf32> to vector<8x128xf32>
      %46 = arith.mulf %43, %45 : vector<8x128xf32>
      %c0_21 = arith.constant 0 : index
      %c0_22 = arith.constant 0 : index
      %47 = vector.load %arg6[%c0_21, %c0_22] : memref<1x128xf32, #tpu.memory_space<vmem>>, vector<1x128xf32>
      %48 = vector.broadcast %47 : vector<1x128xf32> to vector<8x128xf32>
      %49 = arith.addf %46, %48 : vector<8x128xf32>
      %50 = arith.truncf %49 : vector<8x128xf32> to vector<8x128xbf16>
      %c0_23 = arith.constant 0 : index
      %c0_24 = arith.constant 0 : index
      %51 = vector.load %arg7[%c0_23, %c0_24] : memref<128x128xbf16, #tpu.memory_space<vmem>>, vector<128x128xbf16>
      %cst_25 = arith.constant dense<0.000000e+00> : vector<8x128xf32>
      %52 = tpu.matmul %50, %51, %cst_25 {dimension_numbers = #tpu.dot_dimension_numbers<[1], [0], [0], [1], [0, 0, 1, 1], [], []>} : vector<8x128xbf16>, vector<128x128xbf16>, vector<8x128xf32> -> vector<8x128xf32>
      %c0_26 = arith.constant 0 : index
      %c0_27 = arith.constant 0 : index
      %53 = vector.load %arg8[%c0_26, %c0_27] : memref<1x128xf32, #tpu.memory_space<vmem>>, vector<1x128xf32>
      %54 = vector.broadcast %53 : vector<1x128xf32> to vector<8x128xf32>
      %55 = arith.addf %52, %54 : vector<8x128xf32>
      %cst_28 = arith.constant 0.000000e+00 : f32
      %56 = vector.broadcast %cst_28 : f32 to vector<8x128xf32>
      %57 = arith.maximumf %55, %56 : vector<8x128xf32>
      %c1_i32_29 = arith.constant 1 : i32
      %58 = arith.cmpi eq, %arg0, %c1_i32_29 : i32
      %59 = arith.extui %58 : i1 to i32
      %c0_i32_30 = arith.constant 0 : i32
      %60 = arith.cmpi ne, %59, %c0_i32_30 : i32
      scf.if %60 {
        %64 = vector.broadcast %20 : vector<8x1xf32> to vector<8x128xf32>
        %65 = arith.mulf %57, %64 : vector<8x128xf32>
        %c0_32 = arith.constant 0 : index
        %c0_33 = arith.constant 0 : index
        %66 = vector.load %arg16[%c0_32, %c0_33] : memref<1x128xf32, #tpu.memory_space<vmem>>, vector<1x128xf32>
        %cst_34 = arith.constant dense<0.000000e+00> : vector<128xf32>
        %67 = vector.multi_reduction <add>, %65, %cst_34 [0] : vector<8x128xf32> to vector<128xf32>
        %68 = vector.shape_cast %67 : vector<128xf32> to vector<1x128xf32>
        %69 = arith.addf %66, %68 : vector<1x128xf32>
        %c0_35 = arith.constant 0 : index
        %c0_36 = arith.constant 0 : index
        %70 = vector.load %arg16[%c0_35, %c0_36] : memref<1x128xf32, #tpu.memory_space<vmem>>, vector<1x128xf32>
        tpu.vector_store %arg16[%c0_35, %c0_36], %69 {strides = array<i32>} : memref<1x128xf32, #tpu.memory_space<vmem>>, vector<1x128xf32>,
        %c0_37 = arith.constant 0 : index
        %c0_38 = arith.constant 0 : index
        %71 = vector.load %arg17[%c0_37, %c0_38] : memref<1x128xf32, #tpu.memory_space<vmem>>, vector<1x128xf32>
        %72 = arith.mulf %65, %65 : vector<8x128xf32>
        %cst_39 = arith.constant dense<0.000000e+00> : vector<128xf32>
        %73 = vector.multi_reduction <add>, %72, %cst_39 [0] : vector<8x128xf32> to vector<128xf32>
        %74 = vector.shape_cast %73 : vector<128xf32> to vector<1x128xf32>
        %75 = arith.addf %71, %74 : vector<1x128xf32>
        %c0_40 = arith.constant 0 : index
        %c0_41 = arith.constant 0 : index
        %76 = vector.load %arg17[%c0_40, %c0_41] : memref<1x128xf32, #tpu.memory_space<vmem>>, vector<1x128xf32>
        tpu.vector_store %arg17[%c0_40, %c0_41], %75 {strides = array<i32>} : memref<1x128xf32, #tpu.memory_space<vmem>>, vector<1x128xf32>,
      } else {
      }
      %c2_i32 = arith.constant 2 : i32
      %61 = arith.cmpi eq, %arg0, %c2_i32 : i32
      %62 = arith.extui %61 : i1 to i32
      %c0_i32_31 = arith.constant 0 : i32
      %63 = arith.cmpi ne, %62, %c0_i32_31 : i32
      scf.if %63 {
        %c0_32 = arith.constant 0 : index
        %c0_33 = arith.constant 0 : index
        %64 = vector.load %arg16[%c0_32, %c0_33] : memref<1x128xf32, #tpu.memory_space<vmem>>, vector<1x128xf32>
        %65 = vector.broadcast %cst_11 : f32 to vector<1x128xf32>
        %66 = arith.mulf %64, %65 : vector<1x128xf32>
        %c0_34 = arith.constant 0 : index
        %c0_35 = arith.constant 0 : index
        %67 = vector.load %arg17[%c0_34, %c0_35] : memref<1x128xf32, #tpu.memory_space<vmem>>, vector<1x128xf32>
        %68 = vector.broadcast %cst_11 : f32 to vector<1x128xf32>
        %69 = arith.mulf %67, %68 : vector<1x128xf32>
        %70 = arith.mulf %66, %66 : vector<1x128xf32>
        %71 = arith.subf %69, %70 : vector<1x128xf32>
        %cst_36 = arith.constant 0.000000e+00 : f32
        %72 = vector.broadcast %cst_36 : f32 to vector<1x128xf32>
        %73 = arith.maximumf %71, %72 : vector<1x128xf32>
        %74 = vector.broadcast %66 : vector<1x128xf32> to vector<8x128xf32>
        %75 = arith.subf %57, %74 : vector<8x128xf32>
        %cst_37 = arith.constant 9.99999974E-6 : f32
        %76 = vector.broadcast %cst_37 : f32 to vector<1x128xf32>
        %77 = arith.addf %73, %76 : vector<1x128xf32>
        %78 = math.rsqrt %77 : vector<1x128xf32>
        %79 = vector.broadcast %78 : vector<1x128xf32> to vector<8x128xf32>
        %80 = arith.mulf %75, %79 : vector<8x128xf32>
        %c0_38 = arith.constant 0 : index
        %c0_39 = arith.constant 0 : index
        %81 = vector.load %arg9[%c0_38, %c0_39] : memref<1x128xf32, #tpu.memory_space<vmem>>, vector<1x128xf32>
        %82 = vector.broadcast %81 : vector<1x128xf32> to vector<8x128xf32>
        %83 = arith.mulf %80, %82 : vector<8x128xf32>
        %c0_40 = arith.constant 0 : index
        %c0_41 = arith.constant 0 : index
        %84 = vector.load %arg10[%c0_40, %c0_41] : memref<1x128xf32, #tpu.memory_space<vmem>>, vector<1x128xf32>
        %85 = vector.broadcast %84 : vector<1x128xf32> to vector<8x128xf32>
        %86 = arith.addf %83, %85 : vector<8x128xf32>
        %87 = arith.truncf %86 : vector<8x128xf32> to vector<8x128xbf16>
        %c0_42 = arith.constant 0 : index
        %c0_43 = arith.constant 0 : index
        %88 = vector.load %arg11[%c0_42, %c0_43] : memref<128x128xbf16, #tpu.memory_space<vmem>>, vector<128x128xbf16>
        %cst_44 = arith.constant dense<0.000000e+00> : vector<8x128xf32>
        %89 = tpu.matmul %87, %88, %cst_44 {dimension_numbers = #tpu.dot_dimension_numbers<[1], [0], [0], [1], [0, 0, 1, 1], [], []>} : vector<8x128xbf16>, vector<128x128xbf16>, vector<8x128xf32> -> vector<8x128xf32>
        %c0_45 = arith.constant 0 : index
        %c0_46 = arith.constant 0 : index
        %90 = vector.load %arg12[%c0_45, %c0_46] : memref<1x128xf32, #tpu.memory_space<vmem>>, vector<1x128xf32>
        %91 = vector.broadcast %90 : vector<1x128xf32> to vector<8x128xf32>
        %92 = arith.addf %89, %91 : vector<8x128xf32>
        %c0_47 = arith.constant 0 : index
        %c0_48 = arith.constant 0 : index
        %93 = vector.load %arg13[%c0_47, %c0_48] : memref<8x128xf32, #tpu.memory_space<vmem>>, vector<8x128xf32>
        tpu.vector_store %arg13[%c0_47, %c0_48], %92 {strides = array<i32>} : memref<8x128xf32, #tpu.memory_space<vmem>>, vector<8x128xf32>,
      } else {
      }
    } else {
    }
    return
  }
  func.func @transform_0(%arg0: i32, %arg1: i32) -> (i32, i32) {
    %c0_i32 = arith.constant 0 : i32
    %c0_i32_0 = arith.constant 0 : i32
    return %arg1, %c0_i32 : i32, i32
  }
  func.func @transform_1(%arg0: i32, %arg1: i32) -> (i32, i32) {
    %c0_i32 = arith.constant 0 : i32
    %c0_i32_0 = arith.constant 0 : i32
    %c0_i32_1 = arith.constant 0 : i32
    return %c0_i32, %c0_i32_0 : i32, i32
  }
  func.func @transform_2(%arg0: i32, %arg1: i32) -> (i32, i32) {
    %c0_i32 = arith.constant 0 : i32
    %c0_i32_0 = arith.constant 0 : i32
    %c0_i32_1 = arith.constant 0 : i32
    return %c0_i32, %c0_i32_0 : i32, i32
  }
  func.func @transform_3(%arg0: i32, %arg1: i32) -> (i32, i32) {
    %c0_i32 = arith.constant 0 : i32
    %c0_i32_0 = arith.constant 0 : i32
    %c0_i32_1 = arith.constant 0 : i32
    return %c0_i32, %c0_i32_0 : i32, i32
  }
  func.func @transform_4(%arg0: i32, %arg1: i32) -> (i32, i32) {
    %c0_i32 = arith.constant 0 : i32
    %c0_i32_0 = arith.constant 0 : i32
    %c0_i32_1 = arith.constant 0 : i32
    return %c0_i32, %c0_i32_0 : i32, i32
  }
  func.func @transform_5(%arg0: i32, %arg1: i32) -> (i32, i32) {
    %c0_i32 = arith.constant 0 : i32
    %c0_i32_0 = arith.constant 0 : i32
    %c0_i32_1 = arith.constant 0 : i32
    return %c0_i32, %c0_i32_0 : i32, i32
  }
  func.func @transform_6(%arg0: i32, %arg1: i32) -> (i32, i32) {
    %c0_i32 = arith.constant 0 : i32
    %c0_i32_0 = arith.constant 0 : i32
    %c0_i32_1 = arith.constant 0 : i32
    return %c0_i32, %c0_i32_0 : i32, i32
  }
  func.func @transform_7(%arg0: i32, %arg1: i32) -> (i32, i32) {
    %c0_i32 = arith.constant 0 : i32
    %c0_i32_0 = arith.constant 0 : i32
    %c0_i32_1 = arith.constant 0 : i32
    return %c0_i32, %c0_i32_0 : i32, i32
  }
  func.func @transform_8(%arg0: i32, %arg1: i32) -> (i32, i32) {
    %c0_i32 = arith.constant 0 : i32
    %c0_i32_0 = arith.constant 0 : i32
    %c0_i32_1 = arith.constant 0 : i32
    return %c0_i32, %c0_i32_0 : i32, i32
  }
  func.func @transform_9(%arg0: i32, %arg1: i32) -> (i32, i32) {
    %c0_i32 = arith.constant 0 : i32
    %c0_i32_0 = arith.constant 0 : i32
    %c0_i32_1 = arith.constant 0 : i32
    return %c0_i32, %c0_i32_0 : i32, i32
  }
  func.func @transform_10(%arg0: i32, %arg1: i32) -> (i32, i32) {
    %c0_i32 = arith.constant 0 : i32
    %c0_i32_0 = arith.constant 0 : i32
    %c0_i32_1 = arith.constant 0 : i32
    return %c0_i32, %c0_i32_0 : i32, i32
  }
  func.func @transform_11(%arg0: i32, %arg1: i32) -> (i32, i32) {
    %c2_i32 = arith.constant 2 : i32
    %0 = arith.cmpi eq, %arg0, %c2_i32 : i32
    %c0_i32 = arith.constant 0 : i32
    %1 = arith.select %0, %arg1, %c0_i32 : i32
    %c0_i32_0 = arith.constant 0 : i32
    %c0_i32_1 = arith.constant 0 : i32
    return %1, %c0_i32_0 : i32, i32
  }
}

</mosaic_0001>

<bundles_post_ra>
// kernel: tpu_custom_call.1
= control target key start
LH: loop header
LB: loop body
LE: loop exit
PB: predicated region body
PF: predicated region fallthrough
CT: control target
= control target key end

     0   :  { %s1499_s0 = inlined_call_operand.hbm [shape: bf16[8,32], index: 0, kind: input, shape index: {}]   ;;  %s1500_s1 = inlined_call_operand.hbm [shape: bf16[32,128], index: 1, kind: input, shape index: {}]   ;;  %s1501_s2 = inlined_call_operand.vmem [shape: f32[1,128], index: 2, kind: input, shape index: {}]   ;;  %s1502_s3 = inlined_call_operand.vmem [shape: f32[1,128], index: 3, kind: input, shape index: {}]   ;;  %s1503_s4 = inlined_call_operand.vmem [shape: f32[1,128], index: 4, kind: input, shape index: {}]   ;;  %s1504_s5 = inlined_call_operand.hbm [shape: bf16[128,128], index: 5, kind: input, shape index: {}]   ;;  %s1505_s6 = inlined_call_operand.vmem [shape: f32[1,128], index: 6, kind: input, shape index: {}]   ;;  %s1506_s7 = inlined_call_operand.vmem [shape: f32[1,128], index: 7, kind: input, shape index: {}]   ;;  %s1507_s8 = inlined_call_operand.vmem [shape: f32[1,128], index: 8, kind: input, shape index: {}]   ;;  %s1508_s9 = inlined_call_operand.hbm [shape: bf16[128,128], index: 9, kind: input, shape index: {}]   ;;  %s1509_s10 = inlined_call_operand.vmem [shape: f32[1,128], index: 10, kind: input, shape index: {}]   ;;  %s1510_s11 = inlined_call_operand.hbm [shape: f32[8,128], index: 11, kind: output, shape index: {}]  }
   0x1   :  { %1512 = sst [smem:[#allocation19_spill]] %s1499_s0 }
   0x2   :  { %1513 = sst [smem:[#allocation20_spill]] %s1500_s1 }
   0x3   :  { %16 = vsyncpa [#allocation7], 0 }
   0x4   :  { %17 = vsyncpa [#allocation10], 0 }
   0x5   :  { %18 = vsyncpa [#allocation13], 0 }
   0x6   :  { %19 = vsyncpa [#allocation8], 0 }
   0x7   :  { %21 = vsyncpa [#allocation8 + $0x1], 0  ;;  %s1382_s17 = smov 0   ;;  %s1384_s18 = smov 0  }
   0x8   :  { %s1386_s19 = smov 0  }
   0x9 LB: > { %s1514_s1 = sld [smem:[#allocation20_spill]]  ;;  %s1511_s23 = sadd.s32 4294967295, %s1312_s19   ;;  %s1312_s19 = sphi %s1386_s19, %s27_s19   ;;  %s1308_s18 = sphi %s1384_s18, %s1522_s18   ;;  %s1304_s17 = sphi %s1382_s17, %s1521_s17  }
   0xa   : > { %p924_p0 = scmp.ge.s32.totalorder %s1312_s19, 1  ;;  %p310_p1 = scmp.lt.s32.totalorder %s1312_s19, 4 }
   0xb   : > { %p1406_p2 = scmp.eq.s32.totalorder %s1511_s23, 0  ;;  %s1314_s27 = smov [#allocation9]  }
   0xc   : > { %p1410_p3 = pnand %p924_p0, %p310_p1  ;;  %s337_s28 = sshll.u32 %s1314_s27, 4  ;;  %s338_s28 = int_to_ptr.vmem [resolvable:$true] %s337_s28 }
   0xd   : > { %s39_s30 = sadd.s32 1, %s1308_s18  ;;  %s1315_s12 = smov 64  }
   0xe   : > { %p1055_p4 = pneg %p1410_p3  ;;  %s1316_s13 = smov 4  }
   0xf   : > { %s335_s22 = sshll.u32 %s1514_s1, 4  ;;  %p41_p6 = scmp.ge.s32.totalorder %s39_s30, 3  ;;  %s336_s22 = int_to_ptr.hbm [resolvable:$true] %s335_s22 }
  0x10   : > { %p1418_p5 = pnand %p1406_p2, %p1055_p4  ;;  %s1518_s0 = sld [smem:[#allocation19_spill]] }
  0x11   : > { %s1524_s30 = smov (%p41_p6, %s39_s30), 0  ;;  %s1317_s20 = smov [#allocation6]  }
  0x12   : > { %1061 = dma.hbm_to_vmem [thread:$0]  (!%p1418_p5), %s336_s22, 256, %s338_s28, [#allocation10], %s1315_s12, %s1315_s12, %s1316_s13  }
  0x13   : > { %s326_s21 = sshll.u32 %s1317_s20, 4  ;;  %s358_s23 = sshll.u32 %s1504_s5, 4  ;;  %s327_s21 = int_to_ptr.vmem [resolvable:$true] %s326_s21  ;;  %s359_s23 = int_to_ptr.hbm [resolvable:$true] %s358_s23 }
  0x14   : > { %s381_s1 = sshll.u32 %s1508_s9, 4  ;;  %s1318_s14 = smov [#allocation11]   ;;  %s382_s1 = int_to_ptr.hbm [resolvable:$true] %s381_s1 }
  0x15   : > { %s360_s15 = sshll.u32 %s1318_s14, 4  ;;  %s361_s15 = int_to_ptr.vmem [resolvable:$true] %s360_s15 }
  0x16   : > { %s324_s16 = sshll.u32 %s1518_s0, 4  ;;  %s1319_s0 = smov [#allocation12]   ;;  %s325_s16 = int_to_ptr.hbm [resolvable:$true] %s324_s16 }
  0x17   : > { %1058 = dma.hbm_to_vmem [thread:$0]  (!%p1418_p5), %s325_s16, 64, %s327_s21, [#allocation7]  }
  0x18   : > { %1064 = dma.hbm_to_vmem [thread:$0]  (!%p1418_p5), %s359_s23, 1024, %s361_s15, [#allocation10], %s1315_s12, %s1315_s12, %s1316_s13  }
  0x19   : > { %s383_s20 = sshll.u32 %s1319_s0, 4  ;;  %402 = sbr.rel (%p1410_p3) target bundleno = 582 (0x246), region = 64  ;;  %s384_s20 = int_to_ptr.vmem [resolvable:$true] %s383_s20 }
  0x1a   : > { %1067 = dma.hbm_to_vmem [thread:$0]  (!%p1418_p5), %s382_s1, 1024, %s384_s20, [#allocation13], %s1315_s12, %s1315_s12, %s1316_s13  }
  0x1e   : > { %1287 = dma.done.wait (%p1406_p2), [#allocation7], 64  }
  0x1f   : > { %1289 = vsyncadd (%p1406_p2), [#allocation7], 4294967232 }
  0x20   : > { %1291 = dma.done.wait (%p1406_p2), [#allocation10], 1280  }
  0x21   : > { %1293 = vsyncadd (%p1406_p2), [#allocation10], 4294966016 }
  0x22   : > { %1295 = dma.done.wait (%p1406_p2), [#allocation13], 1024  }
  0x23   : > { %1297 = vsyncadd (%p1406_p2), [#allocation13], 4294966272  ;;  %p456_p7 = scmp.eq.s32.totalorder %s1304_s17, 0 }
  0x24   : > { %v1320_v0 = vmov (%p456_p7), 0.0  }
  0x25   : > { %461 = sbr.rel (!%p456_p7) target bundleno = 42 (0x2a), region = 84  ;;  %462 = vst [vmem:[#allocation2] sm:$0x1] (%p456_p7), %v1320_v0 }
  0x26   : > { %463 = vst [vmem:[#allocation3] sm:$0x1] (%p456_p7), %v1320_v0 }
  0x27   : > { %464 = vst [vmem:[#allocation4] sm:$0x1] (%p456_p7), %v1320_v0 }
  0x28   : > { %465 = vst [vmem:[#allocation5] sm:$0x1] (%p456_p7), %v1320_v0 }
  0x2a PF: > { %v1018_v1 = vld [vmem:[#allocation9 + $0x8] sm:$0xff]  ;;  %v1017_v2 = vld [vmem:[#allocation9] sm:$0xff]  ;;  %v466_v3 = vld [vmem:[#allocation6] sm:$0xf]  ;;  %vm487_vm0 = vcmask 261120   ;;  %p944_p8 = scmp.ne.s32.totalorder %s1304_s17, 0 }
  0x2b   : > { %497 = vmatpush.bf16.msra.mxu0 %v1018_v1  ;;  %v1115_v4 = vld [vmem:[%s1501_s2] ss:$0 sm:$0xff] }
  0x2f   : > { %498 = vmatpush.bf16.msra.mxu0 %v1017_v2 }
  0x32   : > { %943 = vmatmul.msk.bf16.vlgmr.msra.gmra.mxu0 %vm487_vm0, %v466_v3 }
  0xaf   : > { %v500_v5 = vpop.f32.mrf.mxu0 }
  0xb0   : > { %v501_v6 = vadd.f32 %v1115_v4, %v500_v5 }
  0xb2   : > { %v504_v7 = vmax.f32 %v501_v6, 0.0 }
  0xb3   : > { %515 = sbr.rel (%p944_p8) target bundleno = 201 (0xc9), region = 88 }
  0xb7   : > { %v502_v8 = vpop.f32.mrf.mxu0 }
  0xb8   : > { %v518_v9 = vrot.slane %v504_v7, 4  ;;  %v527_v10 = vmul.f32 %v504_v7, %v504_v7  ;;  %v517_v19 = vld [vmem:[#allocation2] sm:$0x1]  ;;  %v526_v22 = vld [vmem:[#allocation3] sm:$0x1] }
  0xba   : > { %v519_v11 = vadd.f32 %v518_v9, %v504_v7  ;;  %v528_v12 = vrot.slane %v527_v10, 4 }
  0xbc   : > { %v520_v13 = vrot.slane %v519_v11, 2  ;;  %v529_v14 = vadd.f32 %v528_v12, %v527_v10 }
  0xbe   : > { %v521_v15 = vadd.f32 %v520_v13, %v519_v11  ;;  %v530_v16 = vrot.slane %v529_v14, 2 }
  0xc0   : > { %v522_v17 = vrot.slane %v521_v15, 1  ;;  %v531_v18 = vadd.f32 %v530_v16, %v529_v14 }
  0xc2   : > { %v523_v20 = vadd.f32 %v522_v17, %v521_v15  ;;  %v532_v21 = vrot.slane %v531_v18, 1 }
  0xc4   : > { %v524_v23 = vadd.f32 %v523_v20, %v517_v19  ;;  %v533_v24 = vadd.f32 %v532_v21, %v531_v18 }
  0xc6   : > { %525 = vst [vmem:[#allocation2] sm:$0x1] %v524_v23  ;;  %v534_v25 = vadd.f32 %v533_v24, %v526_v22 }
  0xc8   : > { %535 = vst [vmem:[#allocation3] sm:$0x1] %v534_v25 }
  0xc9 PF: > { %p945_p9 = scmp.lt.s32.totalorder %s1304_s17, 1 }
  0xca   : > { %p978_p10 = scmp.ne.s32.totalorder (!%p945_p9), %s1304_s17, 1 }
  0xcb   : > { %539 = sbr.rel (%p945_p9) target bundleno = 578 (0x242), region = 92 }
  0xd0   : > { %v1026_v26 = vld [vmem:[#allocation11 + $0x38] sm:$0xff]  ;;  %v1025_v27 = vld [vmem:[#allocation11 + $0x30] sm:$0xff]  ;;  %v540_v28 = vld [vmem:[#allocation2] sm:$0x1] }
  0xd1   : > { %645 = vmatpush.bf16.msra.mxu0 %v1026_v26  ;;  %v541_v29 = vmul.f32 0.125, %v540_v28  ;;  %v542_v30 = vld [vmem:[#allocation3] sm:$0x1]  ;;  %v1023_v36 = vld [vmem:[#allocation11 + $0x20] sm:$0xff]  ;;  %v1022_v38 = vld [vmem:[#allocation11 + $0x18] sm:$0xff] }
  0xd2   : > { %v543_v31 = vmul.f32 0.125, %v542_v30  ;;  %v1024_v33 = vld [vmem:[#allocation11 + $0x28] sm:$0xff]  ;;  %v1021_v39 = vld [vmem:[#allocation11 + $0x10] sm:$0xff]  ;;  %v1019_v46 = vld [vmem:[#allocation11] sm:$0xff] }
  0xd3   : > { %v544_v32 = vmul.f32 %v541_v29, %v541_v29  ;;  %v1020_v42 = vld [vmem:[#allocation11 + $0x8] sm:$0xff]  ;;  %v548_v45 = vperm.slane %v541_v29, 0 }
  0xd4   : > { %v1116_v52 = vld [vmem:[%s1502_s3] ss:$0 sm:$0xff] }
  0xd5   : > { %646 = vmatpush.bf16.msra.mxu0 %v1025_v27  ;;  %v545_v34 = vsub.f32 %v543_v31, %v544_v32  ;;  %v550_v49 = vsub.f32 %v504_v7, %v548_v45  ;;  %v1117_v54 = vld [vmem:[%s1503_s4] ss:$0 sm:$0xff] }
  0xd6   : > { %v1118_v58 = vld [vmem:[%s1505_s6] ss:$0 sm:$0xff] }
  0xd7   : > { %v546_v35 = vmax.f32 %v545_v34, 0.0 }
  0xd9   : > { %647 = vmatpush.bf16.msra.mxu0 %v1024_v33  ;;  %v551_v37 = vadd.f32 1e-05, %v546_v35 }
  0xdb   : > { %1119 = vrsqrt.f32 %v551_v37  ;;  %vm558_vm1 = vweird.f32 %v551_v37 }
  0xdd   : > { %648 = vmatpush.bf16.msra.mxu0 %v1023_v36 }
  0xe1   : > { %649 = vmatpush.bf16.msra.mxu0 %v1022_v38  ;;  %v1120_v40 = vpop.eup %1119 }
  0xe2   : > { %v553_v41 = vmul.f32 %v1120_v40, %v551_v37  ;;  %vm559_vm2 = vweird.f32 %v1120_v40 }
  0xe3   : > { %vm560_vm3 = vmor %vm558_vm1, %vm559_vm2 }
  0xe4   : > { %v554_v43 = vmul.f32 %v1120_v40, %v553_v41 }
  0xe5   : > { %650 = vmatpush.bf16.msra.mxu0 %v1021_v39 }
  0xe6   : > { %v555_v44 = vmul.f32 0.5, %v554_v43 }
  0xe8   : > { %v556_v47 = vsub.f32 1.5, %v555_v44 }
  0xe9   : > { %651 = vmatpush.bf16.msra.mxu0 %v1020_v42 }
  0xea   : > { %v557_v48 = vmul.f32 %v1120_v40, %v556_v47 }
  0xec   : > { %v561_v50 = vsel %vm560_vm3, %v1120_v40, %v557_v48 }
  0xed   : > { %652 = vmatpush.bf16.msra.mxu0 %v1019_v46  ;;  %v563_v51 = vperm.slane %v561_v50, 0 }
  0xef   : > { %v565_v53 = vmul.f32 %v563_v51, %v550_v49 }
  0xf1   : > { %v570_v55 = vmul.f32 %v1116_v52, %v565_v53 }
  0xf3   : > { %v575_v56 = vadd.f32 %v1117_v54, %v570_v55 }
  0xf5   : > { %v576_v57 = vpack.c.bf16 %v575_v56, %v575_v56 }
  0xf7   : > { %653 = vmatmul.bf16.vlgmr.msra.gmra.mxu0 %v576_v57 }
 0x174   : > { %v654_v59 = vpop.f32.mrf.mxu0 }
 0x175   : > { %v655_v60 = vadd.f32 %v1118_v58, %v654_v59 }
 0x177   : > { %v658_v61 = vmax.f32 %v655_v60, 0.0 }
 0x178   : > { %662 = sbr.rel (%p978_p10) target bundleno = 398 (0x18e), region = 96 }
 0x17c   : > { %v656_v62 = vpop.f32.mrf.mxu0 }
 0x17d   : > { %v665_v63 = vrot.slane %v658_v61, 4  ;;  %v674_v0 = vmul.f32 %v658_v61, %v658_v61  ;;  %v664_v9 = vld [vmem:[#allocation4] sm:$0x1]  ;;  %v673_v12 = vld [vmem:[#allocation5] sm:$0x1] }
 0x17f   : > { %v666_v1 = vadd.f32 %v665_v63, %v658_v61  ;;  %v675_v2 = vrot.slane %v674_v0, 4 }
 0x181   : > { %v667_v3 = vrot.slane %v666_v1, 2  ;;  %v676_v4 = vadd.f32 %v675_v2, %v674_v0 }
 0x183   : > { %v668_v5 = vadd.f32 %v667_v3, %v666_v1  ;;  %v677_v6 = vrot.slane %v676_v4, 2 }
 0x185   : > { %v669_v7 = vrot.slane %v668_v5, 1  ;;  %v678_v8 = vadd.f32 %v677_v6, %v676_v4 }
 0x187   : > { %v670_v10 = vadd.f32 %v669_v7, %v668_v5  ;;  %v679_v11 = vrot.slane %v678_v8, 1 }
 0x189   : > { %v671_v13 = vadd.f32 %v670_v10, %v664_v9  ;;  %v680_v14 = vadd.f32 %v679_v11, %v678_v8 }
 0x18b   : > { %672 = vst [vmem:[#allocation4] sm:$0x1] %v671_v13  ;;  %v681_v15 = vadd.f32 %v680_v14, %v673_v12 }
 0x18d   : > { %682 = vst [vmem:[#allocation5] sm:$0x1] %v681_v15 }
 0x18e PF: > { %p979_p11 = scmp.ne.s32.totalorder %s1304_s17, 2 }
 0x190   : > { %686 = sbr.rel (%p979_p11) target bundleno = 578 (0x242), region = 100 }
 0x195   : > { %v1034_v16 = vld [vmem:[#allocation12 + $0x38] sm:$0xff]  ;;  %v1033_v17 = vld [vmem:[#allocation12 + $0x30] sm:$0xff]  ;;  %v687_v18 = vld [vmem:[#allocation4] sm:$0x1] }
 0x196   : > { %792 = vmatpush.bf16.msra.mxu0 %v1034_v16  ;;  %v688_v19 = vmul.f32 0.125, %v687_v18  ;;  %v689_v20 = vld [vmem:[#allocation5] sm:$0x1]  ;;  %v1031_v26 = vld [vmem:[#allocation12 + $0x20] sm:$0xff]  ;;  %v1030_v28 = vld [vmem:[#allocation12 + $0x18] sm:$0xff] }
 0x197   : > { %v690_v21 = vmul.f32 0.125, %v689_v20  ;;  %v1032_v23 = vld [vmem:[#allocation12 + $0x28] sm:$0xff]  ;;  %v1029_v29 = vld [vmem:[#allocation12 + $0x10] sm:$0xff]  ;;  %v1027_v36 = vld [vmem:[#allocation12] sm:$0xff] }
 0x198   : > { %v691_v22 = vmul.f32 %v688_v19, %v688_v19  ;;  %v1028_v32 = vld [vmem:[#allocation12 + $0x8] sm:$0xff]  ;;  %v695_v35 = vperm.slane %v688_v19, 0 }
 0x199   : > { %v1121_v42 = vld [vmem:[%s1506_s7] ss:$0 sm:$0xff] }
 0x19a   : > { %793 = vmatpush.bf16.msra.mxu0 %v1033_v17  ;;  %v692_v24 = vsub.f32 %v690_v21, %v691_v22  ;;  %v697_v39 = vsub.f32 %v658_v61, %v695_v35  ;;  %v1122_v44 = vld [vmem:[%s1507_s8] ss:$0 sm:$0xff] }
 0x19b   : > { %v1123_v48 = vld [vmem:[%s1509_s10] ss:$0 sm:$0xff] }
 0x19c   : > { %v693_v25 = vmax.f32 %v692_v24, 0.0 }
 0x19e   : > { %794 = vmatpush.bf16.msra.mxu0 %v1032_v23  ;;  %v698_v27 = vadd.f32 1e-05, %v693_v25 }
 0x1a0   : > { %1124 = vrsqrt.f32 %v698_v27  ;;  %vm705_vm4 = vweird.f32 %v698_v27 }
 0x1a2   : > { %795 = vmatpush.bf16.msra.mxu0 %v1031_v26 }
 0x1a6   : > { %796 = vmatpush.bf16.msra.mxu0 %v1030_v28  ;;  %v1125_v30 = vpop.eup %1124 }
 0x1a7   : > { %v700_v31 = vmul.f32 %v1125_v30, %v698_v27  ;;  %vm706_vm5 = vweird.f32 %v1125_v30 }
 0x1a8   : > { %vm707_vm6 = vmor %vm705_vm4, %vm706_vm5 }
 0x1a9   : > { %v701_v33 = vmul.f32 %v1125_v30, %v700_v31 }
 0x1aa   : > { %797 = vmatpush.bf16.msra.mxu0 %v1029_v29 }
 0x1ab   : > { %v702_v34 = vmul.f32 0.5, %v701_v33 }
 0x1ad   : > { %v703_v37 = vsub.f32 1.5, %v702_v34 }
 0x1ae   : > { %798 = vmatpush.bf16.msra.mxu0 %v1028_v32 }
 0x1af   : > { %v704_v38 = vmul.f32 %v1125_v30, %v703_v37 }
 0x1b1   : > { %v708_v40 = vsel %vm707_vm6, %v1125_v30, %v704_v38 }
 0x1b2   : > { %799 = vmatpush.bf16.msra.mxu0 %v1027_v36  ;;  %v710_v41 = vperm.slane %v708_v40, 0 }
 0x1b4   : > { %v712_v43 = vmul.f32 %v710_v41, %v697_v39 }
 0x1b6   : > { %v717_v45 = vmul.f32 %v1121_v42, %v712_v43 }
 0x1b8   : > { %v722_v46 = vadd.f32 %v1122_v44, %v717_v45 }
 0x1ba   : > { %v723_v47 = vpack.c.bf16 %v722_v46, %v722_v46 }
 0x1bc   : > { %800 = vmatmul.bf16.vlgmr.msra.gmra.mxu0 %v723_v47 }
 0x239   : > { %v801_v49 = vpop.f32.mrf.mxu0 }
 0x23a   : > { %v802_v50 = vadd.f32 %v1123_v48, %v801_v49 }
 0x23c   : > { %805 = vst [vmem:[#allocation14] sm:$0xff] %v802_v50 }
 0x241   : > { %v803_v51 = vpop.f32.mrf.mxu0 }
 0x242 PF: > { %s1519_s28 = sadd.s32 4294967295, %s1312_s19   ;;  %s823_s20 = sshll.u32 %s1510_s11, 4  ;;  %s824_s20 = int_to_ptr.hbm [resolvable:$true] %s823_s20 }
 0x243   : > { %p1080_p12 = scmp.eq.s32.totalorder %s1519_s28, 2  ;;  %s1321_s0 = smov [#allocation14]  }
 0x244   : > { %s821_s1 = sshll.u32 %s1321_s0, 4  ;;  %s822_s1 = int_to_ptr.vmem [resolvable:$true] %s821_s1 }
 0x245   : > { %1052 = dma.vmem_to_hbm [thread:$0]  (%p1080_p12), %s822_s1, 128, %s824_s20, [#allocation8]  }
 0x246 PF: > { %p1081_p13 = scmp.ge.s32.totalorder %s1312_s19, 2  ;;  %s1520_s23 = sadd.s32 4294967294, %s1312_s19  }
 0x247   : > { %p1082_p0 = scmp.eq.s32.totalorder %s1520_s23, 2 }
 0x249   : > { %p1069_p1 = pnand %p1082_p0, %p1081_p13 }
 0x24b   : > { %p1070_p2 = pneg %p1069_p1 }
 0x24d   : > { %1299 = dma.done.wait (%p1070_p2), [#allocation8], 128  }
 0x24e   : > { %1301 = vsyncadd (%p1070_p2), [#allocation8], 4294967168  ;;  %s27_s19 = sadd.s32 1, %s1312_s19   ;;  %s1521_s17 = smov %s1308_s18 }
 0x24f   : > { %p24_p3 = scmp.ge.s32.totalorder %s27_s19, 5   ;;  %s1522_s18 = smov %s1524_s30 }
 0x251   :  { %26 = sbr.rel (!%p24_p3) target bundleno = 9 (0x9), region = 134 }
 0x256   :  { %842 = vsyncpa [#allocation7], 1 }
 0x257   :  { %844 = vsyncpa [#allocation7 + $0x1], 1 }
 0x258   :  { %845 = vsyncpa [#allocation10], 1 }
 0x259   :  { %846 = vsyncpa [#allocation13], 1 }
 0x25a   :  { %847 = vsyncpa [#allocation8], 1 }
 0x25b   :  { %849 = vsyncpa [#allocation8 + $0x1], 1 }

</bundles_post_ra>
